<compile_context>
chip_gen: v6e
topology: v6e:2x2x1
jax: 0.10.0
libtpu: 0.0.40
codegen_flags: <defaults>
</compile_context>

<pallas_src>
import math

import jax
import jax.numpy as jnp
import numpy as np
from jax.experimental import pallas as pl
from jax.experimental.pallas import tpu as pltpu

H = 64          # hidden width of the original module
H2 = 2 * H      # fused / padded lane-dense hidden width (128 lanes)


def _ceil_to(x, m):
    return -(-x // m) * m


# ----------------------------------------------------------------------------
# Kernel
def make_kernel(S, D, C, IN_W, DP, OUT_W):
    """Fused evaluate() kernel for static (state_dim, n_discrete, n_cont)."""

    def kernel(in_ref, wdv_ref, wc_ref, bm_ref, out_ref):
        f32 = jnp.float32
        xin = in_ref[...]                                # (TB, IN_W) packed input slab
        tb = xin.shape[0]

        # --- bias / misc slab rows ------------------------------------------------
        b1dv = bm_ref[0:1, :]                            # (1, 128)
        b2dv = bm_ref[1:2, :]
        b3dv = bm_ref[2:3, :]
        cb1 = bm_ref[3:4, :]
        cb2 = bm_ref[4:5, :]
        cb3 = bm_ref[5:6, :]
        inv_var = bm_ref[6:7, 0:C]                       # (1, C)   = 1/var
        clogp_const = bm_ref[6:7, C:C + 1]               # (1, 1)   = -0.5*(logdet + C*log 2pi)

        # --- fused discrete-actor + critic branch (128-wide hidden) ----------------
        # The non-state lanes of xin (cont. actions, action bits) hit all-zero
        # weight rows, so the full slab can feed the matmul without slicing.
        h = jnp.tanh(jnp.dot(xin, wdv_ref[0:IN_W, :], preferred_element_type=f32) + b1dv)
        h = jnp.tanh(jnp.dot(h, wdv_ref[IN_W:IN_W + H2, :],
                             preferred_element_type=f32) + b2dv)
        y3 = jnp.dot(h, wdv_ref[IN_W + H2:IN_W + 2 * H2, :],
                     preferred_element_type=f32) + b3dv
        logits = y3[:, 0:D]                              # (TB, D)
        value = y3[:, D:D + 1]                           # (TB, 1)  critic output

        # --- softmax / log-softmax (max-stabilized) ---------------------------------
        m = jnp.max(logits, axis=-1, keepdims=True)
        e = jnp.exp(logits - m)
        denom = jnp.sum(e, axis=-1, keepdims=True)
        inv = pl.reciprocal(denom, approx=True)          # EUP seed ...
        inv = inv * (2.0 - denom * inv)                  # ... + 1 Newton step
        probs = e * inv
        log_probs = (logits - m) - jnp.log(denom)

        # Categorical.log_prob via one-hot (no dynamic gather on TPU lanes)
        lane_ids = jax.lax.broadcasted_iota(jnp.int32, (tb, D), 1)
        dact = pltpu.bitcast(xin[:, S + C:S + C + 1], jnp.int32)   # exact int bits
        onehot = (lane_ids == dact).astype(f32)
        dlogp = jnp.sum(onehot * log_probs, axis=-1, keepdims=True)
        dent = -jnp.sum(probs * log_probs, axis=-1, keepdims=True)

        # --- continuous actor on cat([probs, states]) -------------------------------
        # probs part as a tiny K=DP MXU matmul (zero-padded to 8 lanes/rows),
        # state part reuses the full packed slab against zero-padded weight rows.
        if DP > D:
            probs_pad = jnp.concatenate(
                [probs, jnp.zeros((tb, DP - D), f32)], axis=-1)
        else:
            probs_pad = probs
        pre = (jnp.dot(probs_pad, wc_ref[0:DP, :], preferred_element_type=f32)
               + jnp.dot(xin, wc_ref[DP:DP + IN_W, :], preferred_element_type=f32)
               + cb1)
        hc = jnp.tanh(pre)
        hc = jnp.tanh(jnp.dot(hc, wc_ref[DP + IN_W:DP + IN_W + H2, :],
                              preferred_element_type=f32) + cb2)
        mean_full = jnp.tanh(jnp.dot(hc, wc_ref[DP + IN_W + H2:DP + IN_W + 2 * H2, :],
                                     preferred_element_type=f32) + cb3)
        mean = mean_full[:, 0:C]                         # (TB, C)

        # --- MultivariateNormal(mean, diag(var)) log_prob ---------------------------
        cact = xin[:, S:S + C]
        diff = cact - mean
        maha = jnp.sum(diff * diff * inv_var, axis=-1, keepdims=True)
        clogp = -0.5 * maha + clogp_const

        # --- single composed full-width store ----------------------------------------
        used = 4 + D + C
        pieces = [dlogp, clogp, value, dent, probs, mean]
        if OUT_W > used:
            pieces.append(jnp.zeros((tb, OUT_W - used), f32))
        out_ref[...] = jnp.concatenate(pieces, axis=-1)

    return kernel


# ----------------------------------------------------------------------------
# Parameters
def init_params(key, state_dim, action_dim, action_std_init):
    """Deterministic synthetic raw parameters. Weights are (in, out)."""
    D, C = action_dim
    ks = jax.random.split(key, 9)

    def lin(k, fan_in, fan_out):
        w = 0.1 * jax.random.normal(k, (fan_in, fan_out), dtype=jnp.float32)
        b = 0.01 * jnp.ones((1, fan_out), dtype=jnp.float32)
        return w, b

    p = {}
    p["dW1"], p["db1"] = lin(ks[0], state_dim, H)
    p["dW2"], p["db2"] = lin(ks[1], H, H)
    p["dW3"], p["db3"] = lin(ks[2], H, D)
    p["cW1"], p["cb1"] = lin(ks[3], D + state_dim, H)   # acts on cat([probs, state])
    p["cW2"], p["cb2"] = lin(ks[4], H, H)
    p["cW3"], p["cb3"] = lin(ks[5], H, C)
    p["vW1"], p["vb1"] = lin(ks[6], state_dim, H)
    p["vW2"], p["vb2"] = lin(ks[7], H, H)
    p["vW3"], p["vb3"] = lin(ks[8], H, 1)
    p["var"] = jnp.full((1, C), action_std_init * action_std_init, dtype=jnp.float32)
    return p


def pack_params(p, state_dim, action_dim):
    """Pack raw params into 3 lane-dense slabs + host-side constants."""
    D, C = action_dim
    S = state_dim
    f32 = jnp.float32
    assert D + 1 <= H2 and C <= H and C + 1 <= H2

    IN_W = _ceil_to(S + C + 1, 8)   # [states | cont-actions | action-bits] lanes
    DP = _ceil_to(D, 8)             # probs lanes padded for the K=DP matmul

    # fused discrete-actor + critic branch (zero rows for non-state input lanes)
    W1dv = jnp.zeros((IN_W, H2), f32).at[:S, :H].set(p["dW1"]).at[:S, H:].set(p["vW1"])
    b1dv = jnp.concatenate([p["db1"], p["vb1"]], axis=1)                  # (1, 128)
    W2dv = jnp.zeros((H2, H2), f32).at[:H, :H].set(p["dW2"]).at[H:, H:].set(p["vW2"])
    b2dv = jnp.concatenate([p["db2"], p["vb2"]], axis=1)
    W3dv = jnp.zeros((H2, H2), f32).at[:H, :D].set(p["dW3"]).at[H:, D:D + 1].set(p["vW3"])
    b3dv = jnp.zeros((1, H2), f32).at[:, :D].set(p["db3"]).at[:, D:D + 1].set(p["vb3"])
    wdv = jnp.concatenate([W1dv, W2dv, W3dv], axis=0)                     # (IN_W+256, 128)

    # continuous branch, zero-padded to 128 lanes (padded units stay exactly 0)
    cWp1 = jnp.zeros((DP, H2), f32).at[:D, :H].set(p["cW1"][:D])
    cWs1 = jnp.zeros((IN_W, H2), f32).at[:S, :H].set(p["cW1"][D:])
    cW2 = jnp.zeros((H2, H2), f32).at[:H, :H].set(p["cW2"])
    cW3 = jnp.zeros((H2, H2), f32).at[:H, :C].set(p["cW3"])
    wc = jnp.concatenate([cWp1, cWs1, cW2, cW3], axis=0)                  # (DP+IN_W+256, 128)

    # bias + misc slab (8, 128)
    var = p["var"][0]                                                      # (C,)
    log2pi = math.log(2.0 * math.pi)
    sum_log_var = jnp.sum(jnp.log(var))
    clogp_const = -0.5 * (sum_log_var + C * log2pi)
    cent_const = 0.5 * C * (1.0 + log2pi) + 0.5 * sum_log_var              # batch-independent

    bm = jnp.zeros((8, H2), f32)
    bm = bm.at[0].set(b1dv[0]).at[1].set(b2dv[0]).at[2].set(b3dv[0])
    bm = bm.at[3, :H].set(p["cb1"][0]).at[4, :H].set(p["cb2"][0]).at[5, :C].set(p["cb3"][0])
    bm = bm.at[6, :C].set(1.0 / var).at[6, C].set(clogp_const)

    return dict(wdv=wdv, wc=wc, bias_misc=bm, cent_const=cent_const,
                S=S, D=D, C=C, IN_W=IN_W, DP=DP)


# ----------------------------------------------------------------------------
# Wrapper
def _choose_tiles(B, tile_b):
    """Pick (TILE_B, padded B). Large tiles amortize the ~0.35us/step overhead;
    mid-sized batches are split into 2 tiles so v7x megacore can use both TCs."""
    b8 = _ceil_to(B, 8)
    tile_b = max(8, _ceil_to(tile_b, 8))
    if b8 <= tile_b:
        if b8 >= 512:                       # enough work: give each TC one tile
            half = _ceil_to(-(-b8 // 2), 8)
            return half, 2 * half
        return b8, b8
    return tile_b, _ceil_to(b8, tile_b)


def actor_critic_evaluate(packed, states, discrete_actions, continuous_actions,
                          *, tile_b=2048):
    """Pallas implementation of ActorCritic.evaluate()."""
    S, D, C = packed["S"], packed["D"], packed["C"]
    IN_W, DP = packed["IN_W"], packed["DP"]
    OUT_W = _ceil_to(4 + D + C, 8)          # lane-dense, no padding writeback
    B = states.shape[0]

    TILE_B, Bp = _choose_tiles(B, tile_b)

    # one packed input slab: [states | continuous_actions | discrete-action bits]
    slab = jnp.zeros((Bp, IN_W), jnp.float32)
    slab = slab.at[:B, 0:S].set(jnp.asarray(states, jnp.float32))
    slab = slab.at[:B, S:S + C].set(jnp.asarray(continuous_actions, jnp.float32))
    da_bits = jax.lax.bitcast_convert_type(
        jnp.asarray(discrete_actions, jnp.int32), jnp.float32)
    slab = slab.at[:B, S + C].set(da_bits)

    wdv, wc, bm = packed["wdv"], packed["wc"], packed["bias_misc"]
    grid = (Bp // TILE_B,)

    cost = pl.CostEstimate(
        flops=int(2 * Bp * H2 * (2 * IN_W + DP + 4 * H2)),
        transcendentals=int(Bp * (5 * H2 + D + 4)),
        bytes_accessed=int(4 * (Bp * (IN_W + OUT_W) + wdv.size + wc.size + bm.size)),
    )

    # NOTE: the three parameter slabs use a constant index_map; Mosaic keeps them
    # resident and does not re-fetch them per grid step.
    out = pl.pallas_call(
        make_kernel(S, D, C, IN_W, DP, OUT_W),
        out_shape=jax.ShapeDtypeStruct((Bp, OUT_W), jnp.float32),
        grid=grid,
        in_specs=[
            pl.BlockSpec((TILE_B, IN_W), lambda i: (i, 0)),     # packed activations (tiled)
            pl.BlockSpec(wdv.shape, lambda i: (0, 0)),          # resident weight slab
            pl.BlockSpec(wc.shape, lambda i: (0, 0)),           # resident weight slab
            pl.BlockSpec(bm.shape, lambda i: (0, 0)),           # resident bias/misc slab
        ],
        out_specs=pl.BlockSpec((TILE_B, OUT_W), lambda i: (i, 0)),
        compiler_params=pltpu.CompilerParams(
            dimension_semantics=("parallel",),                  # v7x: shard over 2 TCs
            vmem_limit_bytes=48 * 1024 * 1024,                  # <=64 MiB on v7x
        ),
        cost_estimate=cost,
    )(slab, wdv, wc, bm)

    out = out[:B]
    dlogp = out[:, 0]
    clogp = out[:, 1]
    values = out[:, 2:3]
    dent = out[:, 3]
    probs = out[:, 4:4 + D]
    mean = out[:, 4 + D:4 + D + C]
    cent = jnp.full((B,), packed["cent_const"], dtype=jnp.float32)  # parameter-only const
    return dlogp, clogp, values, dent, cent, probs, mean


# ----------------------------------------------------------------------------
# Pure-JAX reference (mirrors the PyTorch module) for the correctness check.
def _reference_evaluate(p, states, dact, cact):
    def mlp(x, layers):
        for i, (w, b) in enumerate(layers):
            x = x @ w + b
            if i < len(layers) - 1:
                x = jnp.tanh(x)
        return x

    logits = mlp(states, [(p["dW1"], p["db1"]), (p["dW2"], p["db2"]), (p["dW3"], p["db3"])])
    probs = jax.nn.softmax(logits, axis=-1)
    logp = jnp.log(probs)
    dlogp = jnp.take_along_axis(logp, dact[:, None], axis=-1)[:, 0]
    dent = -jnp.sum(probs * logp, axis=-1)

    dstate = jnp.concatenate([probs, states], axis=1)
    mean = jnp.tanh(mlp(dstate, [(p["cW1"], p["cb1"]), (p["cW2"], p["cb2"]),
                                 (p["cW3"], p["cb3"])]))
    var = p["var"][0]
    C = var.shape[0]
    clogp = (-0.5 * jnp.sum((cact - mean) ** 2 / var, axis=-1)
             - 0.5 * jnp.sum(jnp.log(var)) - 0.5 * C * jnp.log(2 * jnp.pi))
    cent = jnp.full((mean.shape[0],),
                    0.5 * C * (1 + jnp.log(2 * jnp.pi)) + 0.5 * jnp.sum(jnp.log(var)))
    values = mlp(states, [(p["vW1"], p["vb1"]), (p["vW2"], p["vb2"]), (p["vW3"], p["vb3"])])
    return dlogp, clogp, values, dent, cent, probs, mean


if __name__ == "__main__":
    B = 8
    state_dim = 16
    action_dim = (3, 2)          # (num discrete actions, continuous action dim)
    action_std_init = 0.6

    key = jax.random.PRNGKey(0)
    kp, ks, kd, kc = jax.random.split(key, 4)

    raw = init_params(kp, state_dim, action_dim, action_std_init)
    packed = pack_params(raw, state_dim, action_dim)

    states = jax.random.normal(ks, (B, state_dim), dtype=jnp.float32)
    discrete_actions = jax.random.randint(kd, (B,), 0, action_dim[0], dtype=jnp.int32)
    continuous_actions = jax.random.normal(kc, (B, action_dim[1]), dtype=jnp.float32)

    outs = actor_critic_evaluate(packed, states, discrete_actions, continuous_actions)
    outs = jax.block_until_ready(outs)

    ref = _reference_evaluate(raw, states, discrete_actions, continuous_actions)
    for got, want in zip(outs, ref):
        np.testing.assert_allclose(np.asarray(got), np.asarray(want),
                                   rtol=1e-4, atol=1e-5)

    print("KERNEL_OK")
</pallas_src>

<mosaic_0001>
module attributes {stable_mosaic.version = 11 : i64} {
  func.func @kernel(%arg0: i32, %arg1: memref<8x24xf32, #tpu.memory_space<vmem>>, %arg2: memref<280x128xf32, #tpu.memory_space<vmem>>, %arg3: memref<288x128xf32, #tpu.memory_space<vmem>>, %arg4: memref<8x128xf32, #tpu.memory_space<vmem>>, %arg5: memref<8x16xf32, #tpu.memory_space<vmem>>) attributes {dimension_semantics = [#tpu.dimension_semantics<parallel>], iteration_bounds = array<i64: 1>, scalar_prefetch = 0 : i64, scratch_operands = 0 : i64, tpu.core_type = #tpu.core_type<tc>, window_params = [{transform_indices = @transform_0, window_bounds = array<i64: 8, 24>}, {pipeline_mode = #tpu.pipeline_mode<synchronous>, transform_indices = @transform_1, window_bounds = array<i64: 280, 128>}, {pipeline_mode = #tpu.pipeline_mode<synchronous>, transform_indices = @transform_2, window_bounds = array<i64: 288, 128>}, {pipeline_mode = #tpu.pipeline_mode<synchronous>, transform_indices = @transform_3, window_bounds = array<i64: 8, 128>}, {transform_indices = @transform_4, window_bounds = array<i64: 8, 16>}]} {
    %c0 = arith.constant 0 : index
    %c0_0 = arith.constant 0 : index
    %0 = vector.load %arg1[%c0, %c0_0] : memref<8x24xf32, #tpu.memory_space<vmem>>, vector<8x24xf32>
    %c0_1 = arith.constant 0 : index
    %c0_2 = arith.constant 0 : index
    %1 = vector.load %arg4[%c0_1, %c0_2] : memref<8x128xf32, #tpu.memory_space<vmem>>, vector<1x128xf32>
    %c1 = arith.constant 1 : index
    %c0_3 = arith.constant 0 : index
    %2 = vector.load %arg4[%c1, %c0_3] : memref<8x128xf32, #tpu.memory_space<vmem>>, vector<1x128xf32>
    %c2 = arith.constant 2 : index
    %c0_4 = arith.constant 0 : index
    %3 = vector.load %arg4[%c2, %c0_4] : memref<8x128xf32, #tpu.memory_space<vmem>>, vector<1x128xf32>
    %c3 = arith.constant 3 : index
    %c0_5 = arith.constant 0 : index
    %4 = vector.load %arg4[%c3, %c0_5] : memref<8x128xf32, #tpu.memory_space<vmem>>, vector<1x128xf32>
    %c4 = arith.constant 4 : index
    %c0_6 = arith.constant 0 : index
    %5 = vector.load %arg4[%c4, %c0_6] : memref<8x128xf32, #tpu.memory_space<vmem>>, vector<1x128xf32>
    %c5 = arith.constant 5 : index
    %c0_7 = arith.constant 0 : index
    %6 = vector.load %arg4[%c5, %c0_7] : memref<8x128xf32, #tpu.memory_space<vmem>>, vector<1x128xf32>
    %c6 = arith.constant 6 : index
    %c0_8 = arith.constant 0 : index
    %7 = vector.load %arg4[%c6, %c0_8] : memref<8x128xf32, #tpu.memory_space<vmem>>, vector<1x2xf32>
    %c6_9 = arith.constant 6 : index
    %c2_10 = arith.constant 2 : index
    %8 = vector.load %arg4[%c6_9, %c2_10] : memref<8x128xf32, #tpu.memory_space<vmem>>, vector<1x1xf32>
    %c0_11 = arith.constant 0 : index
    %c0_12 = arith.constant 0 : index
    %9 = vector.load %arg2[%c0_11, %c0_12] : memref<280x128xf32, #tpu.memory_space<vmem>>, vector<24x128xf32>
    %cst = arith.constant dense<0.000000e+00> : vector<8x128xf32>
    %10 = tpu.matmul %0, %9, %cst {dimension_numbers = #tpu.dot_dimension_numbers<[1], [0], [0], [1], [0, 0, 1, 1], [], []>} : vector<8x24xf32>, vector<24x128xf32>, vector<8x128xf32> -> vector<8x128xf32>
    %11 = vector.broadcast %1 : vector<1x128xf32> to vector<8x128xf32>
    %12 = arith.addf %10, %11 : vector<8x128xf32>
    %13 = math.tanh %12 : vector<8x128xf32>
    %c24 = arith.constant 24 : index
    %c0_13 = arith.constant 0 : index
    %14 = vector.load %arg2[%c24, %c0_13] : memref<280x128xf32, #tpu.memory_space<vmem>>, vector<128x128xf32>
    %cst_14 = arith.constant dense<0.000000e+00> : vector<8x128xf32>
    %15 = tpu.matmul %13, %14, %cst_14 {dimension_numbers = #tpu.dot_dimension_numbers<[1], [0], [0], [1], [0, 0, 1, 1], [], []>} : vector<8x128xf32>, vector<128x128xf32>, vector<8x128xf32> -> vector<8x128xf32>
    %16 = vector.broadcast %2 : vector<1x128xf32> to vector<8x128xf32>
    %17 = arith.addf %15, %16 : vector<8x128xf32>
    %18 = math.tanh %17 : vector<8x128xf32>
    %c152 = arith.constant 152 : index
    %c0_15 = arith.constant 0 : index
    %19 = vector.load %arg2[%c152, %c0_15] : memref<280x128xf32, #tpu.memory_space<vmem>>, vector<128x128xf32>
    %cst_16 = arith.constant dense<0.000000e+00> : vector<8x128xf32>
    %20 = tpu.matmul %18, %19, %cst_16 {dimension_numbers = #tpu.dot_dimension_numbers<[1], [0], [0], [1], [0, 0, 1, 1], [], []>} : vector<8x128xf32>, vector<128x128xf32>, vector<8x128xf32> -> vector<8x128xf32>
    %21 = vector.broadcast %3 : vector<1x128xf32> to vector<8x128xf32>
    %22 = arith.addf %20, %21 : vector<8x128xf32>
    %23 = vector.extract_strided_slice %22 {offsets = [0, 0], sizes = [8, 3], strides = [1, 1]} : vector<8x128xf32> to vector<8x3xf32>
    %24 = vector.extract_strided_slice %22 {offsets = [0, 3], sizes = [8, 1], strides = [1, 1]} : vector<8x128xf32> to vector<8x1xf32>
    %cst_17 = arith.constant dense<0xFF800000> : vector<8xf32>
    %25 = vector.multi_reduction <maximumf>, %23, %cst_17 [1] : vector<8x3xf32> to vector<8xf32>
    %26 = vector.shape_cast %25 : vector<8xf32> to vector<8x1xf32>
    %27 = vector.broadcast %26 : vector<8x1xf32> to vector<8x3xf32>
    %28 = arith.subf %23, %27 : vector<8x3xf32>
    %29 = math.exp %28 : vector<8x3xf32>
    %cst_18 = arith.constant dense<0.000000e+00> : vector<8xf32>
    %30 = vector.multi_reduction <add>, %29, %cst_18 [1] : vector<8x3xf32> to vector<8xf32>
    %31 = vector.shape_cast %30 : vector<8xf32> to vector<8x1xf32>
    %32 = tpu.reciprocal %31 {approx = true} : vector<8x1xf32> -> vector<8x1xf32>
    %33 = arith.mulf %31, %32 : vector<8x1xf32>
    %cst_19 = arith.constant 2.000000e+00 : f32
    %34 = vector.broadcast %cst_19 : f32 to vector<8x1xf32>
    %35 = arith.subf %34, %33 : vector<8x1xf32>
    %36 = arith.mulf %32, %35 : vector<8x1xf32>
    %37 = vector.broadcast %36 : vector<8x1xf32> to vector<8x3xf32>
    %38 = arith.mulf %29, %37 : vector<8x3xf32>
    %39 = vector.broadcast %26 : vector<8x1xf32> to vector<8x3xf32>
    %40 = arith.subf %23, %39 : vector<8x3xf32>
    %41 = math.log %31 : vector<8x1xf32>
    %42 = vector.broadcast %41 : vector<8x1xf32> to vector<8x3xf32>
    %43 = arith.subf %40, %42 : vector<8x3xf32>
    %44 = tpu.iota {dimensions = array<i32: 1>} : vector<8x3xi32>
    %45 = vector.extract_strided_slice %0 {offsets = [0, 18], sizes = [8, 1], strides = [1, 1]} : vector<8x24xf32> to vector<8x1xf32>
    %46 = tpu.bitcast %45 : vector<8x1xf32> -> vector<8x1xi32>
    %47 = vector.broadcast %46 : vector<8x1xi32> to vector<8x3xi32>
    %48 = arith.cmpi eq, %44, %47 : vector<8x3xi32>
    %49 = arith.extui %48 : vector<8x3xi1> to vector<8x3xi32>
    %50 = arith.sitofp %49 : vector<8x3xi32> to vector<8x3xf32>
    %51 = arith.mulf %50, %43 : vector<8x3xf32>
    %cst_20 = arith.constant dense<0.000000e+00> : vector<8xf32>
    %52 = vector.multi_reduction <add>, %51, %cst_20 [1] : vector<8x3xf32> to vector<8xf32>
    %53 = vector.shape_cast %52 : vector<8xf32> to vector<8x1xf32>
    %54 = arith.mulf %38, %43 : vector<8x3xf32>
    %cst_21 = arith.constant dense<0.000000e+00> : vector<8xf32>
    %55 = vector.multi_reduction <add>, %54, %cst_21 [1] : vector<8x3xf32> to vector<8xf32>
    %56 = vector.shape_cast %55 : vector<8xf32> to vector<8x1xf32>
    %cst_22 = arith.constant 0.000000e+00 : f32
    %57 = vector.broadcast %cst_22 : f32 to vector<8x1xf32>
    %58 = arith.subf %57, %56 : vector<8x1xf32>
    %cst_23 = arith.constant 0.000000e+00 : f32
    %59 = vector.broadcast %cst_23 : f32 to vector<8x5xf32>
    %60 = tpu.concatenate %38, %59 in 1 : vector<8x3xf32>, vector<8x5xf32> -> vector<8x8xf32>
    %c0_24 = arith.constant 0 : index
    %c0_25 = arith.constant 0 : index
    %61 = vector.load %arg3[%c0_24, %c0_25] : memref<288x128xf32, #tpu.memory_space<vmem>>, vector<8x128xf32>
    %cst_26 = arith.constant dense<0.000000e+00> : vector<8x128xf32>
    %62 = tpu.matmul %60, %61, %cst_26 {dimension_numbers = #tpu.dot_dimension_numbers<[1], [0], [0], [1], [0, 0, 1, 1], [], []>} : vector<8x8xf32>, vector<8x128xf32>, vector<8x128xf32> -> vector<8x128xf32>
    %c8 = arith.constant 8 : index
    %c0_27 = arith.constant 0 : index
    %63 = vector.load %arg3[%c8, %c0_27] : memref<288x128xf32, #tpu.memory_space<vmem>>, vector<24x128xf32>
    %cst_28 = arith.constant dense<0.000000e+00> : vector<8x128xf32>
    %64 = tpu.matmul %0, %63, %cst_28 {dimension_numbers = #tpu.dot_dimension_numbers<[1], [0], [0], [1], [0, 0, 1, 1], [], []>} : vector<8x24xf32>, vector<24x128xf32>, vector<8x128xf32> -> vector<8x128xf32>
    %65 = arith.addf %62, %64 : vector<8x128xf32>
    %66 = vector.broadcast %4 : vector<1x128xf32> to vector<8x128xf32>
    %67 = arith.addf %65, %66 : vector<8x128xf32>
    %68 = math.tanh %67 : vector<8x128xf32>
    %c32 = arith.constant 32 : index
    %c0_29 = arith.constant 0 : index
    %69 = vector.load %arg3[%c32, %c0_29] : memref<288x128xf32, #tpu.memory_space<vmem>>, vector<128x128xf32>
    %cst_30 = arith.constant dense<0.000000e+00> : vector<8x128xf32>
    %70 = tpu.matmul %68, %69, %cst_30 {dimension_numbers = #tpu.dot_dimension_numbers<[1], [0], [0], [1], [0, 0, 1, 1], [], []>} : vector<8x128xf32>, vector<128x128xf32>, vector<8x128xf32> -> vector<8x128xf32>
    %71 = vector.broadcast %5 : vector<1x128xf32> to vector<8x128xf32>
    %72 = arith.addf %70, %71 : vector<8x128xf32>
    %73 = math.tanh %72 : vector<8x128xf32>
    %c160 = arith.constant 160 : index
    %c0_31 = arith.constant 0 : index
    %74 = vector.load %arg3[%c160, %c0_31] : memref<288x128xf32, #tpu.memory_space<vmem>>, vector<128x128xf32>
    %cst_32 = arith.constant dense<0.000000e+00> : vector<8x128xf32>
    %75 = tpu.matmul %73, %74, %cst_32 {dimension_numbers = #tpu.dot_dimension_numbers<[1], [0], [0], [1], [0, 0, 1, 1], [], []>} : vector<8x128xf32>, vector<128x128xf32>, vector<8x128xf32> -> vector<8x128xf32>
    %76 = vector.broadcast %6 : vector<1x128xf32> to vector<8x128xf32>
    %77 = arith.addf %75, %76 : vector<8x128xf32>
    %78 = math.tanh %77 : vector<8x128xf32>
    %79 = vector.extract_strided_slice %78 {offsets = [0, 0], sizes = [8, 2], strides = [1, 1]} : vector<8x128xf32> to vector<8x2xf32>
    %80 = vector.extract_strided_slice %0 {offsets = [0, 16], sizes = [8, 2], strides = [1, 1]} : vector<8x24xf32> to vector<8x2xf32>
    %81 = arith.subf %80, %79 : vector<8x2xf32>
    %82 = arith.mulf %81, %81 : vector<8x2xf32>
    %83 = vector.broadcast %7 : vector<1x2xf32> to vector<8x2xf32>
    %84 = arith.mulf %82, %83 : vector<8x2xf32>
    %cst_33 = arith.constant dense<0.000000e+00> : vector<8xf32>
    %85 = vector.multi_reduction <add>, %84, %cst_33 [1] : vector<8x2xf32> to vector<8xf32>
    %86 = vector.shape_cast %85 : vector<8xf32> to vector<8x1xf32>
    %cst_34 = arith.constant -5.000000e-01 : f32
    %87 = vector.broadcast %cst_34 : f32 to vector<8x1xf32>
    %88 = arith.mulf %87, %86 : vector<8x1xf32>
    %89 = vector.broadcast %8 : vector<1x1xf32> to vector<8x1xf32>
    %90 = arith.addf %88, %89 : vector<8x1xf32>
    %cst_35 = arith.constant 0.000000e+00 : f32
    %91 = vector.broadcast %cst_35 : f32 to vector<8x7xf32>
    %92 = tpu.concatenate %53, %90, %24, %58, %38, %79, %91 in 1 : vector<8x1xf32>, vector<8x1xf32>, vector<8x1xf32>, vector<8x1xf32>, vector<8x3xf32>, vector<8x2xf32>, vector<8x7xf32> -> vector<8x16xf32>
    %c0_36 = arith.constant 0 : index
    %c0_37 = arith.constant 0 : index
    %93 = vector.load %arg5[%c0_36, %c0_37] : memref<8x16xf32, #tpu.memory_space<vmem>>, vector<8x16xf32>
    tpu.vector_store %arg5[%c0_36, %c0_37], %92 {strides = array<i32>} : memref<8x16xf32, #tpu.memory_space<vmem>>, vector<8x16xf32>,
    return
  }
  func.func @transform_0(%arg0: i32) -> (i32, i32) {
    %c0_i32 = arith.constant 0 : i32
    %c0_i32_0 = arith.constant 0 : i32
    return %arg0, %c0_i32 : i32, i32
  }
  func.func @transform_1(%arg0: i32) -> (i32, i32) {
    %c0_i32 = arith.constant 0 : i32
    %c0_i32_0 = arith.constant 0 : i32
    %c0_i32_1 = arith.constant 0 : i32
    return %c0_i32, %c0_i32_0 : i32, i32
  }
  func.func @transform_2(%arg0: i32) -> (i32, i32) {
    %c0_i32 = arith.constant 0 : i32
    %c0_i32_0 = arith.constant 0 : i32
    %c0_i32_1 = arith.constant 0 : i32
    return %c0_i32, %c0_i32_0 : i32, i32
  }
  func.func @transform_3(%arg0: i32) -> (i32, i32) {
    %c0_i32 = arith.constant 0 : i32
    %c0_i32_0 = arith.constant 0 : i32
    %c0_i32_1 = arith.constant 0 : i32
    return %c0_i32, %c0_i32_0 : i32, i32
  }
  func.func @transform_4(%arg0: i32) -> (i32, i32) {
    %c0_i32 = arith.constant 0 : i32
    %c0_i32_0 = arith.constant 0 : i32
    return %arg0, %c0_i32 : i32, i32
  }
}

</mosaic_0001>

<bundles_post_ra>
// kernel: tpu_custom_call.1
= control target key start
LH: loop header
LB: loop body
LE: loop exit
PB: predicated region body
PF: predicated region fallthrough
CT: control target
= control target key end

     0   :  { %9 = vsyncpa [#allocation3], 0  ;;  %s1350_s0 = inlined_call_operand.hbm [shape: f32[8,24], index: 0, kind: input, shape index: {}]   ;;  %s1351_s1 = inlined_call_operand.hbm [shape: f32[280,128], index: 1, kind: input, shape index: {}]   ;;  %s1352_s2 = inlined_call_operand.hbm [shape: f32[288,128], index: 2, kind: input, shape index: {}]   ;;  %s1353_s3 = inlined_call_operand.hbm [shape: f32[8,128], index: 3, kind: input, shape index: {}]   ;;  %s1354_s4 = inlined_call_operand.hbm [shape: f32[8,16], index: 4, kind: output, shape index: {}]  }
   0x1   :  { %10 = vsyncpa [#allocation6], 0 }
   0x2   :  { %11 = vsyncpa [#allocation9], 0 }
   0x3   :  { %12 = vsyncpa [#allocation4], 0  ;;  %s1174_s15 = smov [#allocation5]  }
   0x4   :  { %s28_s16 = sshll.u32 %s1174_s15, 4  ;;  %s29_s16 = int_to_ptr.vmem [resolvable:$true] %s28_s16 }
   0x5   :  { %s1074_s17 = scalar_lea.vmem %s29_s16, 4480  ;;  %p1079_p1 = scmp.lt.s32.totalorder %s29_s16, %s29_s16 }
   0x6   :  { %p1075_p0 = scmp.ne.s32.totalorder %s29_s16, %s1074_s17  ;;  %p1080_p2 = scmp.lt.s32.totalorder %s1074_s17, %s1074_s17 }
   0x8   :  { %p1081_p3 = por %p1080_p2, %p1079_p1 }
   0xa   :  { %p1082_p4 = pnand %p1081_p3, %p1075_p0 }
   0xc   :  { %1085 = shalt.err (!%p1082_p4)
}
   0xd   :  { %s1175_s18 = smov 128   ;;  %s1176_s19 = smov 8  }
   0xe   :  { %34 = dma.hbm_to_vmem [thread:$0]  %s1351_s1, 4480, %s29_s16, [#allocation6], %s1175_s18, %s1175_s18, %s1176_s19  }
   0xf   :  { %s1177_s22 = smov [#allocation2]   ;;  %s1178_s24 = smov [#allocation7]  }
  0x10   :  { %s19_s23 = sshll.u32 %s1177_s22, 4  ;;  %s40_s25 = sshll.u32 %s1178_s24, 4  ;;  %s20_s23 = int_to_ptr.vmem [resolvable:$true] %s19_s23  ;;  %s41_s25 = int_to_ptr.vmem [resolvable:$true] %s40_s25 }
  0x11   :  { %s1094_s26 = scalar_lea.vmem %s20_s23, 128  ;;  %p1099_p6 = scmp.lt.s32.totalorder %s20_s23, %s20_s23 }
  0x12   :  { %p1095_p5 = scmp.ne.s32.totalorder %s20_s23, %s1094_s26  ;;  %p1100_p7 = scmp.lt.s32.totalorder %s1094_s26, %s1094_s26 }
  0x14   :  { %p1101_p8 = por %p1100_p7, %p1099_p6 }
  0x16   :  { %p1102_p9 = pnand %p1101_p8, %p1095_p5 }
  0x18   :  { %1105 = shalt.err (!%p1102_p9)
}
  0x19   :  { %22 = dma.hbm_to_vmem [thread:$0]  %s1350_s0, 128, %s20_s23, [#allocation3]  }
  0x1a   :  { %s1114_s29 = scalar_lea.vmem %s41_s25, 4608  ;;  %p1119_p11 = scmp.lt.s32.totalorder %s41_s25, %s41_s25 }
  0x1b   :  { %p1115_p10 = scmp.ne.s32.totalorder %s41_s25, %s1114_s29  ;;  %p1120_p12 = scmp.lt.s32.totalorder %s1114_s29, %s1114_s29 }
  0x1d   :  { %p1121_p13 = por %p1120_p12, %p1119_p11 }
  0x1f   :  { %p1122_p0 = pnand %p1121_p13, %p1115_p10 }
  0x21   :  { %1125 = shalt.err (!%p1122_p0)
}
  0x22   :  { %46 = dma.hbm_to_vmem [thread:$0]  %s1352_s2, 4608, %s41_s25, [#allocation6], %s1175_s18, %s1175_s18, %s1176_s19  }
  0x23   :  { %s1179_s5 = smov [#allocation8]  }
  0x24   :  { %s53_s6 = sshll.u32 %s1179_s5, 4  ;;  %s54_s6 = int_to_ptr.vmem [resolvable:$true] %s53_s6 }
  0x25   :  { %s1134_s7 = scalar_lea.vmem %s54_s6, 128  ;;  %p1139_p2 = scmp.lt.s32.totalorder %s54_s6, %s54_s6 }
  0x26   :  { %p1135_p1 = scmp.ne.s32.totalorder %s54_s6, %s1134_s7  ;;  %p1140_p3 = scmp.lt.s32.totalorder %s1134_s7, %s1134_s7 }
  0x28   :  { %p1141_p4 = por %p1140_p3, %p1139_p2 }
  0x2a   :  { %p1142_p5 = pnand %p1141_p4, %p1135_p1 }
  0x2c   :  { %1145 = shalt.err (!%p1142_p5)
}
  0x2d   :  { %56 = dma.hbm_to_vmem [thread:$0]  %s1353_s3, 128, %s54_s6, [#allocation9]  }
  0x2e   :  { %1166 = dma.done.wait [#allocation3], 128  }
  0x2f   :  { %1167 = vsyncadd [#allocation3], 4294967168 }
  0x30   :  { %1168 = dma.done.wait [#allocation6], 9088  }
  0x31   :  { %1169 = vsyncadd [#allocation6], 4294958208 }
  0x32   :  { %1170 = dma.done.wait [#allocation9], 128  }
  0x33   :  { %1171 = vsyncadd [#allocation9], 4294967168  ;;  %v1180_v0 = vmov 0.0   ;;  %vm1181_vm0 = vmmov 0   ;;  %v79_v1 = vld [vmem:[#allocation5 + $0x10] sm:$0xff]  ;;  %v78_v2 = vld [vmem:[#allocation5 + $0x8] sm:$0xff] }
  0x34   :  { %870 = vmatprep.subr.mxu0 %v1180_v0  ;;  %876 = vmatprep.mubr.msk.f32.mxu0 %vm1181_vm0, %v1180_v0  ;;  %v174_v3 = vld [vmem:[#allocation5 + $0x90] sm:$0xff]  ;;  %v173_v4 = vld [vmem:[#allocation5 + $0x88] sm:$0xff]  ;;  %v77_v5 = vld [vmem:[#allocation5] sm:$0xff]  ;;  %vm84_vm1 = vcmask 195584   ;;  %vm340_vm2 = vcmask 23552   ;;  %vm450_vm3 = vcmask 64512  }
  0x35   :  { %879 = vmatprep.subr.mxu1 %v1180_v0  ;;  %911 = vmatprep.mubr.msk.f32.mxu1 %vm1181_vm0, %v1180_v0  ;;  %v1233_v6 = vld [vmem:[#allocation2] sm:$0xff]  ;;  %v172_v7 = vld [vmem:[#allocation5 + $0x80] sm:$0xff]  ;;  %v170_v9 = vld [vmem:[#allocation5 + $0x70] sm:$0xff]  ;;  %s1183_s2 = smov 16   ;;  %s1184_s3 = smov 112   ;;  %vm731_vm5 = vcmask 15360  }
  0x36   :  { %871 = vmatpush3.msra.mxu0 %v79_v1  ;;  %880 = vmatpush3.msra.mxu1 %v174_v3  ;;  %v171_v8 = vld [vmem:[#allocation5 + $0x78] sm:$0xff]  ;;  %v169_v10 = vld [vmem:[#allocation5 + $0x68] sm:$0xff]  ;;  %v168_v11 = vld [vmem:[#allocation5 + $0x60] sm:$0xff]  ;;  %s1185_s9 = smov 127   ;;  %s1186_s10 = smov 4   ;;  %vm752_vm6 = vcmask 7168  }
  0x37   :  { %872 = vmatprep.subr.mxu0 %v1180_v0  ;;  %881 = vmatprep.subr.mxu1 %v1180_v0  ;;  %v167_v12 = vld [vmem:[#allocation5 + $0x58] sm:$0xff]  ;;  %v166_v13 = vld [vmem:[#allocation5 + $0x50] sm:$0xff]  ;;  %v165_v14 = vld [vmem:[#allocation5 + $0x48] sm:$0xff]  ;;  %s1187_s11 = smov 7   ;;  %vm756_vm7 = vcmask 31744   ;;  %vm758_vm8 = vcmask 56320  }
  0x38   :  { %873 = vmatpush3.msra.mxu0 %v78_v2  ;;  %882 = vmatpush3.msra.mxu1 %v173_v4  ;;  %v164_v15 = vld [vmem:[#allocation5 + $0x40] sm:$0xff]  ;;  %v163_v16 = vld [vmem:[#allocation5 + $0x38] sm:$0xff]  ;;  %v162_v17 = vld [vmem:[#allocation5 + $0x30] sm:$0xff]  ;;  %s1188_s12 = smov [#allocation10]   ;;  %vm760_vm9 = vcmask 72704   ;;  %vm762_vm10 = vcmask 130048  }
  0x39   :  { %874 = vmatprep.subr.mxu0 %v1180_v0  ;;  %883 = vmatprep.subr.mxu1 %v1180_v0  ;;  %v161_v18 = vld [vmem:[#allocation5 + $0x28] sm:$0xff]  ;;  %v160_v19 = vld [vmem:[#allocation5 + $0x20] sm:$0xff]  ;;  %v159_v20 = vld [vmem:[#allocation5 + $0x18] sm:$0xff]  ;;  %s770_s13 = sshll.u32 %s1188_s12, 4  ;;  %s771_s13 = int_to_ptr.vmem [resolvable:$true] %s770_s13 }
  0x3a   :  { %875 = vmatpush3.msra.mxu0 %v77_v5  ;;  %884 = vmatpush3.msra.mxu1 %v172_v7  ;;  %v265_v21 = vld [vmem:[#allocation5 + $0x110] sm:$0xff]  ;;  %v264_v22 = vld [vmem:[#allocation5 + $0x108] sm:$0xff]  ;;  %v263_v23 = vld [vmem:[#allocation5 + $0x100] sm:$0xff]  ;;  %s1146_s14 = scalar_lea.vmem %s771_s13, 128  ;;  %p1151_p7 = scmp.lt.s32.totalorder %s771_s13, %s771_s13 }
  0x3b   :  { %877 = vmatmul.mubr.msk.f32.vlgmr.msra.gmra.mxu0 %vm84_vm1, %v1233_v6  ;;  %885 = vmatprep.subr.mxu1 %v1180_v0  ;;  %v262_v24 = vld [vmem:[#allocation5 + $0xf8] sm:$0xff]  ;;  %v261_v25 = vld [vmem:[#allocation5 + $0xf0] sm:$0xff]  ;;  %v260_v26 = vld [vmem:[#allocation5 + $0xe8] sm:$0xff]  ;;  %p1147_p6 = scmp.ne.s32.totalorder %s771_s13, %s1146_s14  ;;  %p1152_p8 = scmp.lt.s32.totalorder %s1146_s14, %s1146_s14 }
  0x3c   :  { %914 = vmatprep.subr.mxu0 %v1180_v0  ;;  %886 = vmatpush3.msra.mxu1 %v171_v8  ;;  %v259_v27 = vld [vmem:[#allocation5 + $0xe0] sm:$0xff]  ;;  %v781_v28 = vld [vmem:[#allocation8] ss:$0 sm:$0xff]  ;;  %v257_v34 = vld [vmem:[#allocation5 + $0xd0] sm:$0xff] }
  0x3d   :  { %946 = vmatprep.mubr.msk.f32.mxu0 %vm1181_vm0, %v1180_v0  ;;  %887 = vmatprep.subr.mxu1 %v1180_v0  ;;  %v258_v33 = vld [vmem:[#allocation5 + $0xd8] sm:$0xff]  ;;  %v256_v35 = vld [vmem:[#allocation5 + $0xc8] sm:$0xff]  ;;  %v255_v36 = vld [vmem:[#allocation5 + $0xc0] sm:$0xff]  ;;  %p1153_p9 = por %p1152_p8, %p1151_p7 }
  0x3e   :  { %888 = vmatpush3.msra.mxu1 %v170_v9  ;;  %915 = vmatpush3.msra.mxu0 %v265_v21  ;;  %v254_v37 = vld [vmem:[#allocation5 + $0xb8] sm:$0xff]  ;;  %v253_v38 = vld [vmem:[#allocation5 + $0xb0] sm:$0xff]  ;;  %v252_v39 = vld [vmem:[#allocation5 + $0xa8] sm:$0xff] }
  0x3f   :  { %889 = vmatprep.subr.mxu1 %v1180_v0  ;;  %916 = vmatprep.subr.mxu0 %v1180_v0  ;;  %v251_v40 = vld [vmem:[#allocation5 + $0xa0] sm:$0xff]  ;;  %v250_v41 = vld [vmem:[#allocation5 + $0x98] sm:$0xff]  ;;  %v379_v57 = vld [vmem:[#allocation7 + $0x18] sm:$0xff]  ;;  %p1154_p10 = pnand %p1153_p9, %p1147_p6 }
  0x40   :  { %890 = vmatpush3.msra.mxu1 %v169_v10  ;;  %917 = vmatpush3.msra.mxu0 %v264_v22  ;;  %v783_v42 = vld [vmem:[#allocation8 + $0x1] ss:$0 sm:$0xff]  ;;  %v784_v47 = vld [vmem:[#allocation8 + $0x2] ss:$0 sm:$0xff]  ;;  %v378_v58 = vld [vmem:[#allocation7 + $0x10] sm:$0xff] }
  0x41   :  { %891 = vmatprep.subr.mxu1 %v1180_v0  ;;  %918 = vmatprep.subr.mxu0 %v1180_v0  ;;  %v376_v59 = vld [vmem:[#allocation7] sm:$0xff]  ;;  %v377_v60 = vld [vmem:[#allocation7 + $0x8] sm:$0xff]  ;;  %v545_v61 = vld [vmem:[#allocation7 + $0x98] sm:$0xff] }
  0x42   :  { %892 = vmatpush3.msra.mxu1 %v168_v11  ;;  %919 = vmatpush3.msra.mxu0 %v263_v23  ;;  %v544_v62 = vld [vmem:[#allocation7 + $0x90] sm:$0xff]  ;;  %v543_v63 = vld [vmem:[#allocation7 + $0x88] sm:$0xff]  ;;  %v542_v1 = vld [vmem:[#allocation7 + $0x80] sm:$0xff] }
  0x43   :  { %893 = vmatprep.subr.mxu1 %v1180_v0  ;;  %920 = vmatprep.subr.mxu0 %v1180_v0  ;;  %v541_v2 = vld [vmem:[#allocation7 + $0x78] sm:$0xff]  ;;  %v540_v3 = vld [vmem:[#allocation7 + $0x70] sm:$0xff]  ;;  %v531_v22 = vld [vmem:[#allocation7 + $0x28] sm:$0xff] }
  0x44   :  { %894 = vmatpush3.msra.mxu1 %v167_v12  ;;  %921 = vmatpush3.msra.mxu0 %v262_v24  ;;  %v532_v21 = vld [vmem:[#allocation7 + $0x30] sm:$0xff]  ;;  %v530_v23 = vld [vmem:[#allocation7 + $0x20] sm:$0xff]  ;;  %v636_v24 = vld [vmem:[#allocation7 + $0x118] sm:$0xff] }
  0x45   :  { %895 = vmatprep.subr.mxu1 %v1180_v0  ;;  %922 = vmatprep.subr.mxu0 %v1180_v0 }
  0x46   :  { %896 = vmatpush3.msra.mxu1 %v166_v13  ;;  %923 = vmatpush3.msra.mxu0 %v261_v25  ;;  %v539_v13 = vld [vmem:[#allocation7 + $0x68] sm:$0xff]  ;;  %v635_v25 = vld [vmem:[#allocation7 + $0x110] sm:$0xff] }
  0x47   :  { %897 = vmatprep.subr.mxu1 %v1180_v0  ;;  %924 = vmatprep.subr.mxu0 %v1180_v0 }
  0x48   :  { %898 = vmatpush3.msra.mxu1 %v165_v14  ;;  %925 = vmatpush3.msra.mxu0 %v260_v26  ;;  %v634_v26 = vld [vmem:[#allocation7 + $0x108] sm:$0xff] }
  0x49   :  { %899 = vmatprep.subr.mxu1 %v1180_v0  ;;  %926 = vmatprep.subr.mxu0 %v1180_v0 }
  0x4a   :  { %900 = vmatpush3.msra.mxu1 %v164_v15  ;;  %927 = vmatpush3.msra.mxu0 %v259_v27  ;;  %v538_v15 = vld [vmem:[#allocation7 + $0x60] sm:$0xff] }
  0x4b   :  { %901 = vmatprep.subr.mxu1 %v1180_v0  ;;  %928 = vmatprep.subr.mxu0 %v1180_v0  ;;  %v633_v27 = vld [vmem:[#allocation7 + $0x100] sm:$0xff] }
  0x4c   :  { %902 = vmatpush3.msra.mxu1 %v163_v16  ;;  %929 = vmatpush3.msra.mxu0 %v258_v33  ;;  %v537_v16 = vld [vmem:[#allocation7 + $0x58] sm:$0xff] }
  0x4d   :  { %903 = vmatprep.subr.mxu1 %v1180_v0  ;;  %930 = vmatprep.subr.mxu0 %v1180_v0 }
  0x4e   :  { %904 = vmatpush3.msra.mxu1 %v162_v17  ;;  %931 = vmatpush3.msra.mxu0 %v257_v34  ;;  %v536_v17 = vld [vmem:[#allocation7 + $0x50] sm:$0xff] }
  0x4f   :  { %905 = vmatprep.subr.mxu1 %v1180_v0  ;;  %932 = vmatprep.subr.mxu0 %v1180_v0 }
  0x50   :  { %906 = vmatpush3.msra.mxu1 %v161_v18  ;;  %933 = vmatpush3.msra.mxu0 %v256_v35  ;;  %v535_v18 = vld [vmem:[#allocation7 + $0x48] sm:$0xff] }
  0x51   :  { %907 = vmatprep.subr.mxu1 %v1180_v0  ;;  %934 = vmatprep.subr.mxu0 %v1180_v0 }
  0x52   :  { %908 = vmatpush3.msra.mxu1 %v160_v19  ;;  %935 = vmatpush3.msra.mxu0 %v255_v36  ;;  %v534_v19 = vld [vmem:[#allocation7 + $0x40] sm:$0xff] }
  0x53   :  { %909 = vmatprep.subr.mxu1 %v1180_v0  ;;  %936 = vmatprep.subr.mxu0 %v1180_v0 }
  0x54   :  { %910 = vmatpush3.msra.mxu1 %v159_v20  ;;  %937 = vmatpush3.msra.mxu0 %v254_v37  ;;  %v533_v20 = vld [vmem:[#allocation7 + $0x38] sm:$0xff]  ;;  %v629_v37 = vld [vmem:[#allocation7 + $0xe0] sm:$0xff] }
  0x55   :  { %949 = vmatprep.subr.mxu1 %v1180_v0  ;;  %938 = vmatprep.subr.mxu0 %v1180_v0 }
  0x56   :  { %939 = vmatpush3.msra.mxu0 %v253_v38  ;;  %v628_v38 = vld [vmem:[#allocation7 + $0xd8] sm:$0xff] }
  0x57   :  { %940 = vmatprep.subr.mxu0 %v1180_v0 }
  0x58   :  { %941 = vmatpush3.msra.mxu0 %v252_v39  ;;  %v627_v39 = vld [vmem:[#allocation7 + $0xd0] sm:$0xff] }
  0x59   :  { %942 = vmatprep.subr.mxu0 %v1180_v0 }
  0x5a   :  { %943 = vmatpush3.msra.mxu0 %v251_v40  ;;  %v626_v40 = vld [vmem:[#allocation7 + $0xc8] sm:$0xff] }
  0x5b   :  { %944 = vmatprep.subr.mxu0 %v1180_v0 }
  0x5c   :  { %945 = vmatpush3.msra.mxu0 %v250_v41  ;;  %v625_v41 = vld [vmem:[#allocation7 + $0xc0] sm:$0xff] }
  0x5d   :  { %958 = vmatprep.subr.mxu0 %v1180_v0 }
  0xfb   :  { %v154_v29 = vpop.f32.mrf.mxu0 }
  0xfc   :  { %v155_v30 = vadd.f32 %v781_v28, %v154_v29  ;;  %v632_v28 = vld [vmem:[#allocation7 + $0xf8] sm:$0xff]  ;;  %v631_v29 = vld [vmem:[#allocation7 + $0xf0] sm:$0xff] }
  0xfd   :  { %v878_v31 = vpop.f32.mrf.mxu0 }
  0xfe   :  { %1050 = vtanh.f32 %v155_v30  ;;  %v630_v30 = vld [vmem:[#allocation7 + $0xe8] sm:$0xff]  ;;  %v788_v31 = vld [vmem:[#allocation8 + $0x3] ss:$0 sm:$0xff] }
 0x10b   :  { %v1051_v32 = vpop.eup %1050 }
 0x10c   :  { %912 = vmatmul.mubr.f32.vlgmr.msra.gmra.mxu1 %v1051_v32 }
 0x10d   :  { %955 = vmatprep.mubr.msk.f32.mxu1 %vm1181_vm0, %v1180_v0  ;;  %950 = vmatpush3.msra.mxu1 %v379_v57 }
 0x10e   :  { %951 = vmatprep.subr.mxu1 %v1180_v0 }
 0x10f   :  { %952 = vmatpush3.msra.mxu1 %v378_v58 }
 0x110   :  { %953 = vmatprep.subr.mxu1 %v1180_v0 }
 0x111   :  { %954 = vmatpush3.msra.mxu1 %v377_v60 }
 0x112   :  { %956 = vmatmul.mubr.msk.f32.vlgmr.msra.gmra.mxu1 %vm84_vm1, %v1233_v6  ;;  %963 = vmatprep.subr.mxu1 %v1180_v0 }
 0x113   :  { %995 = vmatprep.mubr.msk.f32.mxu1 %vm1181_vm0, %v1180_v0  ;;  %964 = vmatpush3.msra.mxu1 %v545_v61 }
 0x114   :  { %965 = vmatprep.subr.mxu1 %v1180_v0 }
 0x115   :  { %966 = vmatpush3.msra.mxu1 %v544_v62 }
 0x116   :  { %967 = vmatprep.subr.mxu1 %v1180_v0 }
 0x117   :  { %968 = vmatpush3.msra.mxu1 %v543_v63 }
 0x118   :  { %969 = vmatprep.subr.mxu1 %v1180_v0 }
 0x119   :  { %970 = vmatpush3.msra.mxu1 %v542_v1 }
 0x11a   :  { %971 = vmatprep.subr.mxu1 %v1180_v0 }
 0x11b   :  { %972 = vmatpush3.msra.mxu1 %v541_v2  ;;  %v358_v2 = vlaneseq }
 0x11c   :  { %973 = vmatprep.subr.mxu1 %v1180_v0 }
 0x11d   :  { %974 = vmatpush3.msra.mxu1 %v540_v3  ;;  %v359_v3 = vand.u32 127, %v358_v2 }
 0x11e   :  { %975 = vmatprep.subr.mxu1 %v1180_v0 }
 0x11f   :  { %976 = vmatpush3.msra.mxu1 %v539_v13 }
 0x120   :  { %977 = vmatprep.subr.mxu1 %v1180_v0 }
 0x121   :  { %978 = vmatpush3.msra.mxu1 %v538_v15 }
 0x122   :  { %979 = vmatprep.subr.mxu1 %v1180_v0 }
 0x123   :  { %980 = vmatpush3.msra.mxu1 %v537_v16 }
 0x124   :  { %981 = vmatprep.subr.mxu1 %v1180_v0 }
 0x125   :  { %982 = vmatpush3.msra.mxu1 %v536_v17 }
 0x126   :  { %983 = vmatprep.subr.mxu1 %v1180_v0 }
 0x127   :  { %984 = vmatpush3.msra.mxu1 %v535_v18 }
 0x128   :  { %985 = vmatprep.subr.mxu1 %v1180_v0 }
 0x129   :  { %986 = vmatpush3.msra.mxu1 %v534_v19 }
 0x12a   :  { %987 = vmatprep.subr.mxu1 %v1180_v0 }
 0x12b   :  { %988 = vmatpush3.msra.mxu1 %v533_v20 }
 0x12c   :  { %989 = vmatprep.subr.mxu1 %v1180_v0 }
 0x12d   :  { %990 = vmatpush3.msra.mxu1 %v532_v21 }
 0x12e   :  { %991 = vmatprep.subr.mxu1 %v1180_v0 }
 0x12f   :  { %992 = vmatpush3.msra.mxu1 %v531_v22 }
 0x130   :  { %993 = vmatprep.subr.mxu1 %v1180_v0 }
 0x131   :  { %994 = vmatpush3.msra.mxu1 %v530_v23 }
 0x1cc   :  { %v245_v43 = vpop.f32.mrf.mxu1 }
 0x1cd   :  { %v246_v44 = vadd.f32 %v783_v42, %v245_v43  ;;  %v624_v42 = vld [vmem:[#allocation7 + $0xb8] sm:$0xff]  ;;  %v623_v43 = vld [vmem:[#allocation7 + $0xb0] sm:$0xff] }
 0x1ce   :  { %v913_v45 = vpop.f32.mrf.mxu1 }
 0x1cf   :  { %1052 = vtanh.f32 %v246_v44  ;;  %v622_v44 = vld [vmem:[#allocation7 + $0xa8] sm:$0xff]  ;;  %v621_v45 = vld [vmem:[#allocation7 + $0xa0] sm:$0xff] }
 0x1d2   :  { %v446_v12 = vpop.f32.mrf.mxu1 }
 0x1d4   :  { %v957_v14 = vpop.f32.mrf.mxu1 }
 0x1dc   :  { %v1053_v46 = vpop.eup %1052 }
 0x1dd   :  { %947 = vmatmul.mubr.f32.vlgmr.msra.gmra.mxu0 %v1053_v46  ;;  %v789_v46 = vld [vmem:[#allocation8 + $0x4] ss:$0 sm:$0xff] }
 0x1de   :  { %960 = vmatprep.mubr.msk.f32.mxu0 %vm1181_vm0, %v1180_v0  ;;  %959 = vmatpush3.msra.mxu0 %v376_v59  ;;  %v791_v59 = vld [vmem:[#allocation8 + $0x6] ss:$0 sm:$0xff] }
 0x1df   :  { %998 = vmatprep.subr.mxu0 %v1180_v0 }
 0x29d   :  { %v336_v48 = vpop.f32.mrf.mxu0 }
 0x29e   :  { %v1277_v49 = vadd.f32 %v784_v47, %v336_v48 }
 0x29f   :  { %v948_v50 = vpop.f32.mrf.mxu0 }
 0x2a0   :  { %v341_v51 = vsel %vm340_vm2, %v1277_v49, -inf }
 0x2a1   :  { %342 = vmax.xlane.f32.xlu0 %v341_v51 }
 0x32a   :  { %v343_v52 = vpop.xlane.xlu0 %342 }
 0x32b   :  { %v1282_v53 = vsub.f32 %v1277_v49, %v343_v52  ;;  %v1182_v52 = vmov 18  }
 0x32c   :  { %1048 = vset.pattern.permute.xlu1 %v1182_v52  ;;  %1049 = vset.pattern.permute.xlu0 %v1182_v52 }
 0x32d   :  { %v345_v54 = vmul.f32 1.442695, %v1282_v53 }
 0x32f   :  { %1054 = vpow2.f32 %v345_v54  ;;  %v790_v54 = vld [vmem:[#allocation8 + $0x5] ss:$0 sm:$0xff] }
 0x33c   :  { %v1055_v55 = vpop.eup %1054 }
 0x33d   :  { %v347_v56 = vsel %vm340_vm2, %v1055_v55, 0.0 }
 0x33e   :  { %348 = vadd.xlane.f32.xlu0 %v347_v56 }
 0x3c7   :  { %v1300_v4 = vpop.xlane.xlu0 %348 }
 0x3c8   :  { %1056 = vrcp.f32 %v1300_v4 }
 0x3d5   :  { %v1057_v5 = vpop.eup %1056 }
 0x3d6   :  { %v351_v7 = vmul.f32 %v1057_v5, %v1300_v4 }
 0x3d8   :  { %v352_v8 = vsub.f32 2.0, %v351_v7 }
 0x3da   :  { %v353_v9 = vmul.f32 %v1057_v5, %v352_v8 }
 0x3dc   :  { %v1304_v10 = vmul.f32 %v1055_v55, %v353_v9 }
 0x3de   :  { %v375_v11 = vsel %vm340_vm2, %v1304_v10, 0.0 }
 0x3df   :  { %961 = vmatmul.mubr.msk.f32.vlgmr.msra.gmra.mxu0 %vm450_vm3, %v375_v11 }
 0x3e0   :  { %1030 = vmatprep.mubr.msk.f32.mxu0 %vm1181_vm0, %v1180_v0  ;;  %999 = vmatpush3.msra.mxu0 %v636_v24 }
 0x3e1   :  { %1000 = vmatprep.subr.mxu0 %v1180_v0 }
 0x3e2   :  { %1001 = vmatpush3.msra.mxu0 %v635_v25 }
 0x3e3   :  { %1002 = vmatprep.subr.mxu0 %v1180_v0 }
 0x3e4   :  { %1003 = vmatpush3.msra.mxu0 %v634_v26 }
 0x3e5   :  { %1004 = vmatprep.subr.mxu0 %v1180_v0 }
 0x3e6   :  { %1005 = vmatpush3.msra.mxu0 %v633_v27 }
 0x3e7   :  { %1006 = vmatprep.subr.mxu0 %v1180_v0 }
 0x3e8   :  { %1007 = vmatpush3.msra.mxu0 %v632_v28 }
 0x3e9   :  { %1008 = vmatprep.subr.mxu0 %v1180_v0 }
 0x3ea   :  { %1009 = vmatpush3.msra.mxu0 %v631_v29 }
 0x3eb   :  { %1010 = vmatprep.subr.mxu0 %v1180_v0 }
 0x3ec   :  { %1011 = vmatpush3.msra.mxu0 %v630_v30 }
 0x3ed   :  { %1012 = vmatprep.subr.mxu0 %v1180_v0 }
 0x3ee   :  { %1013 = vmatpush3.msra.mxu0 %v629_v37 }
 0x3ef   :  { %1014 = vmatprep.subr.mxu0 %v1180_v0 }
 0x3f0   :  { %1015 = vmatpush3.msra.mxu0 %v628_v38 }
 0x3f1   :  { %1016 = vmatprep.subr.mxu0 %v1180_v0 }
 0x3f2   :  { %1017 = vmatpush3.msra.mxu0 %v627_v39 }
 0x3f3   :  { %1018 = vmatprep.subr.mxu0 %v1180_v0 }
 0x3f4   :  { %1019 = vmatpush3.msra.mxu0 %v626_v40 }
 0x3f5   :  { %1020 = vmatprep.subr.mxu0 %v1180_v0 }
 0x3f6   :  { %1021 = vmatpush3.msra.mxu0 %v625_v41 }
 0x3f7   :  { %1022 = vmatprep.subr.mxu0 %v1180_v0 }
 0x3f8   :  { %1023 = vmatpush3.msra.mxu0 %v624_v42 }
 0x3f9   :  { %1024 = vmatprep.subr.mxu0 %v1180_v0 }
 0x3fa   :  { %1025 = vmatpush3.msra.mxu0 %v623_v43 }
 0x3fb   :  { %1026 = vmatprep.subr.mxu0 %v1180_v0 }
 0x3fc   :  { %1027 = vmatpush3.msra.mxu0 %v622_v44 }
 0x3fd   :  { %1028 = vmatprep.subr.mxu0 %v1180_v0 }
 0x3fe   :  { %1029 = vmatpush3.msra.mxu0 %v621_v45 }
 0x49f   :  { %v520_v32 = vpop.f32.mrf.mxu0 }
 0x4a0   :  { %v521_v33 = vadd.f32 %v520_v32, %v446_v12 }
 0x4a1   :  { %v962_v34 = vpop.f32.mrf.mxu0 }
 0x4a2   :  { %v528_v35 = vadd.f32 %v788_v31, %v521_v33 }
 0x4a4   :  { %1058 = vtanh.f32 %v528_v35 }
 0x4b1   :  { %v1059_v36 = vpop.eup %1058 }
 0x4b2   :  { %996 = vmatmul.mubr.f32.vlgmr.msra.gmra.mxu1 %v1059_v36 }
 0x572   :  { %v616_v47 = vpop.f32.mrf.mxu1 }
 0x573   :  { %v617_v48 = vadd.f32 %v789_v46, %v616_v47 }
 0x574   :  { %v997_v50 = vpop.f32.mrf.mxu1 }
 0x575   :  { %1060 = vtanh.f32 %v617_v48 }
 0x582   :  { %v1061_v51 = vpop.eup %1060 }
 0x583   :  { %1031 = vmatmul.mubr.f32.vlgmr.msra.gmra.mxu0 %v1061_v51 }
 0x643   :  { %v707_v55 = vpop.f32.mrf.mxu0 }
 0x644   :  { %v708_v56 = vadd.f32 %v790_v54, %v707_v55 }
 0x645   :  { %v1032_v57 = vpop.f32.mrf.mxu0 }
 0x646   :  { %1062 = vtanh.f32 %v708_v56 }
 0x647   :  { %1064 = vlog2.f32 %v1300_v4 }
 0x653   :  { %v1063_v58 = vpop.eup %1062 }
 0x654   :  { %713 = vrot.lane.b32.xlu1 %v1063_v58, %s1183_s2  ;;  %v1065_v5 = vpop.eup %1064 }
 0x655   :  { %v356_v8 = vmul.f32 0.6931472, %v1065_v5 }
 0x657   :  { %v357_v11 = vsub.f32 %v1282_v53, %v356_v8 }
 0x658   :  { %723 = vrot.lane.b32.xlu1 %v791_v59, %s1183_s2 }
 0x659   :  { %v370_v14 = vmul.f32 %v357_v11, %v1304_v10 }
 0x65b   :  { %v371_v15 = vsel %vm340_vm2, %v370_v14, 0.0 }
 0x65c   :  { %361 = vperm.xlu1 %1048, %v1233_v6  }
 0x6c6   :  { %v714_v60 = vpop.permute.xlu1 %713 }
 0x6c7   :  { %v716_v61 = vsub.f32 %v1233_v6, %v714_v60 }
 0x6c9   :  { %v717_v62 = vmul.f32 %v716_v61, %v716_v61 }
 0x6ca   :  { %v724_v63 = vpop.permute.xlu1 %723 }
 0x6cb   :  { %v726_v1 = vmul.f32 %v724_v63, %v717_v62 }
 0x6cd   :  { %728 = vrot.lane.b32.xlu0 %v726_v1, %s1184_s3 }
 0x6d7   :  { %v362_v7 = vpop.permute.xlu1 %361 }
 0x6d8   :  { %vm363_vm4 = vcmp.eq.s32.totalorder %v359_v3, %v362_v7 }
 0x6d9   :  { %v785_v9 = vsel %vm363_vm4, 1.0, %v1180_v0 }
 0x6da   :  { %v366_v12 = vmul.f32 %v785_v9, %v357_v11 }
 0x6dc   :  { %v367_v6 = vsel %vm340_vm2, %v366_v12, 0.0 }
 0x6ec   :  { %368 = vadd.xlane.f32.xlu0 %v367_v6 }
 0x702   :  { %742 = vrot.lane.b32.xlu0 %v1277_v49, %s1185_s9 }
 0x73f   :  { %v729_v13 = vpop.permute.xlu0 %728 }
 0x740   :  { %v732_v4 = vsel %vm731_vm5, %v729_v13, 0.0 }
 0x741   :  { %733 = vadd.xlane.f32.xlu1 %v732_v4 }
 0x745   :  { %372 = vadd.xlane.f32.xlu1 %v371_v15 }
 0x756   :  { %746 = vrot.lane.b32.xlu1 %v1304_v10, %s1186_s10 }
 0x775   :  { %v369_v17 = vpop.xlane.xlu0 %368 }
 0x779   :  { %v743_v20 = vpop.permute.xlu0 %742 }
 0x7ca   :  { %v734_v0 = vpop.xlane.xlu1 %733 }
 0x7cb   :  { %v735_v53 = vmul.f32 -0.5, %v734_v0 }
 0x7cd   :  { %v736_v16 = vadd.f32 %v791_v59, %v735_v53 }
 0x7ce   :  { %v373_v49 = vpop.xlane.xlu1 %372 }
 0x7cf   :  { %738 = vrot.lane.b32.xlu1 %v736_v16, %s1185_s9  ;;  %v374_v21 = vsub.f32 0.0, %v373_v49 }
 0x7d2   :  { %v747_v18 = vpop.permute.xlu1 %746 }
 0x7d3   :  { %749 = vrot.lane.b32.xlu1 %v1063_v58, %s1187_s11 }
 0x841   :  { %v739_v19 = vpop.permute.xlu1 %738 }
 0x842   :  { %v753_v22 = vsel %vm752_vm6, %v369_v17, %v739_v19 }
 0x843   :  { %v754_v23 = vsel %vm731_vm5, %v753_v22, %v743_v20 }
 0x844   :  { %v755_v10 = vsel %vm340_vm2, %v754_v23, %v374_v21 }
 0x845   :  { %v757_v24 = vsel %vm756_vm7, %v755_v10, %v747_v18  ;;  %v750_v25 = vpop.permute.xlu1 %749 }
 0x846   :  { %v759_v26 = vsel %vm758_vm8, %v757_v24, %v750_v25 }
 0x847   :  { %v761_v27 = vsel %vm760_vm9, %v759_v26, 0.0 }
 0x848   :  { %763 = vst.msk [vmem:[#allocation10] sm:$0xff] %vm762_vm10, %v761_v27 }
 0x849   :  { %1157 = shalt.err (!%p1154_p10)
}
 0x84a   :  { %773 = dma.vmem_to_hbm [thread:$0]  %s771_s13, 128, %s1354_s4, [#allocation4]  }
 0x84b   :  { %1172 = dma.done.wait [#allocation4], 128  }
 0x84c   :  { %1173 = vsyncadd [#allocation4], 4294967168 }
 0x84d   :  { %777 = vsyncpa [#allocation3], 1 }
 0x84e   :  { %778 = vsyncpa [#allocation6], 1 }
 0x84f   :  { %779 = vsyncpa [#allocation9], 1 }
 0x850   :  { %780 = vsyncpa [#allocation4], 1 }

</bundles_post_ra>
